<compile_context>
chip_gen: v7x
topology: tpu7x:2x2x1
jax: 0.10.0
libtpu: 0.0.40
codegen_flags: <defaults>
</compile_context>

<pallas_src>
import functools

import jax
import jax.numpy as jnp
from jax.experimental import pallas as pl
from jax.experimental.pallas import tpu as pltpu


def _two_layer_kernel(x_ref, w1_ref, b1_ref, w2_ref, b2_ref, o_ref):
    # x_ref : (tm, D_in)        row tile of the batch (possibly bf16)
    # w1_ref: (D_in, H_pad)     linear1 weight, pre-transposed [K, N], H padded
    # b1_ref: (1, H_pad)        f32, zero-padded
    # w2_ref: (H_pad, Dout_pad) linear2 weight, pre-transposed [K, N], padded
    # b2_ref: (1, Dout_pad)     f32, padded with -1e30 (kills padded logits)
    # o_ref : (tm, Dout_pad)    f32, lane-dense (multiple of 128)
    x = x_ref[...]

    # Layer 1: x @ W1_t + b1, ReLU.  f32 accumulation; hidden stays on-chip.
    h = jnp.dot(x, w1_ref[...], preferred_element_type=jnp.float32) + b1_ref[...]
    h = jnp.maximum(h, 0.0)

    # Layer 2: h @ W2_t + b2.  Note: h is downcast to the weight dtype (bf16 by
    # default) before the MXU dot -- fine for inference, gate with
    # compute_dtype=float32 for an exact f32 reference match.
    y = (
        jnp.dot(h.astype(w2_ref.dtype), w2_ref[...],
                preferred_element_type=jnp.float32)
        + b2_ref[...]
    )

    # log_softmax along the feature axis (dim=1 in the PyTorch module), in f32.
    # Padded logit columns are ~-1e30 -> contribute exp(...)=0 to the sum.
    m = jnp.max(y, axis=-1, keepdims=True)
    shifted = y - m
    lse = jnp.log(jnp.sum(jnp.exp(shifted), axis=-1, keepdims=True))
    o_ref[...] = (shifted - lse).astype(o_ref.dtype)


def _round_up(a: int, b: int) -> int:
    return (a + b - 1) // b * b


@functools.partial(jax.jit, static_argnames=("block_rows", "compute_dtype"))
def two_layer_net(x, w1, b1, w2, b2, *, block_rows: int = 1024,
                  compute_dtype=jnp.bfloat16):
    """Forward pass of TwoLayerNet: log_softmax(relu(x@W1.T+b1)@W2.T+b2, 1).

    Returns float32 of shape (N, D_out).
    """
    N, D_in = x.shape
    H, D_in_w1 = w1.shape
    D_out, H_w2 = w2.shape
    assert D_in == D_in_w1 and H == H_w2

    # ---- one-time layout plumbing (tiny vs. the matmuls) -------------------
    # MXU-native [K, N] weights, lane-dense (multiple-of-128) feature dims.
    h_p = _round_up(H, 128)
    d_out_p = _round_up(D_out, 128)

    w1_t = jnp.pad(w1.T, ((0, 0), (0, h_p - H))).astype(compute_dtype)
    b1_2d = jnp.pad(b1.reshape(1, H), ((0, 0), (0, h_p - H))).astype(jnp.float32)
    w2_t = jnp.pad(w2.T, ((0, h_p - H), (0, d_out_p - D_out))).astype(compute_dtype)
    # Padded output logits get bias -1e30 so they vanish in the log-softmax.
    b2_2d = jnp.pad(b2.reshape(1, D_out), ((0, 0), (0, d_out_p - D_out)),
                    constant_values=-1e30).astype(jnp.float32)
    x_c = x.astype(compute_dtype)

    # ---- row tiling --------------------------------------------------------
    # Sublane-aligned tile; aim for >= 2 grid blocks so v7x's 2nd TensorCore
    # has work, capped by block_rows.  No jnp.pad of x: ragged last block is
    # handled by the grid (masked writeback).
    half = -(-N // 2)  # ceil(N / 2)
    tm = max(8, min(block_rows, _round_up(half, 8)))
    grid_m = pl.cdiv(N, tm)

    # ---- scheduler hints ---------------------------------------------------
    flops = 2 * N * (D_in * h_p + h_p * d_out_p)
    transcendentals = N * (d_out_p + 1)                      # exp + log
    bytes_accessed = (
        N * D_in * x_c.dtype.itemsize
        + (D_in * h_p + h_p * d_out_p) * jnp.dtype(compute_dtype).itemsize
        + (h_p + d_out_p) * 4
        + N * d_out_p * 4
    )

    out = pl.pallas_call(
        _two_layer_kernel,
        out_shape=jax.ShapeDtypeStruct((N, d_out_p), jnp.float32),
        grid_spec=pl.GridSpec(
            grid=(grid_m,),
            in_specs=[
                # x row tile: pipelined / double-buffered (grid-varying).
                pl.BlockSpec((tm, D_in), lambda i: (i, 0)),
                # Grid-invariant weights & biases: single-buffered.
                pl.BlockSpec((D_in, h_p), lambda i: (0, 0),
                             pipeline_mode=pl.Buffered(1)),
                pl.BlockSpec((1, h_p), lambda i: (0, 0),
                             pipeline_mode=pl.Buffered(1)),
                pl.BlockSpec((h_p, d_out_p), lambda i: (0, 0),
                             pipeline_mode=pl.Buffered(1)),
                pl.BlockSpec((1, d_out_p), lambda i: (0, 0),
                             pipeline_mode=pl.Buffered(1)),
            ],
            out_specs=pl.BlockSpec((tm, d_out_p), lambda i: (i, 0)),
        ),
        compiler_params=pltpu.CompilerParams(
            dimension_semantics=("parallel",),    # independent row tiles
            vmem_limit_bytes=32 * 1024 * 1024,    # raise v5e's 16 MiB default
        ),
        cost_estimate=pl.CostEstimate(
            flops=flops,
            transcendentals=transcendentals,
            bytes_accessed=bytes_accessed,
        ),
    )(x_c, w1_t, b1_2d, w2_t, b2_2d)

    # Drop the lane padding; batch dim was never padded.
    return out[:, :D_out]


if __name__ == "__main__":
    # Small shapes consistent with the module: batch=8, D_in=32, H=64, D_out=16.
    N, D_in, H, D_out = 8, 32, 64, 16

    key = jax.random.PRNGKey(0)
    kx, kw1, kb1, kw2, kb2 = jax.random.split(key, 5)

    x = jax.random.normal(kx, (N, D_in), dtype=jnp.float32)

    # nn.Linear-style init: U(-1/sqrt(fan_in), 1/sqrt(fan_in)).
    bound1 = 1.0 / (D_in ** 0.5)
    w1 = jax.random.uniform(kw1, (H, D_in), jnp.float32, -bound1, bound1)
    b1 = jax.random.uniform(kb1, (H,), jnp.float32, -bound1, bound1)
    bound2 = 1.0 / (H ** 0.5)
    w2 = jax.random.uniform(kw2, (D_out, H), jnp.float32, -bound2, bound2)
    b2 = jax.random.uniform(kb2, (D_out,), jnp.float32, -bound2, bound2)

    # Pure-JAX reference (matches the PyTorch forward exactly, f32).
    h_ref = jnp.maximum(x @ w1.T + b1, 0.0)
    y_ref = jax.nn.log_softmax(h_ref @ w2.T + b2, axis=1)

    # Fast path: bf16 inputs/weights, f32 accumulate (default).
    y_bf16 = jax.block_until_ready(two_layer_net(x, w1, b1, w2, b2))
    assert y_bf16.shape == (N, D_out)
    assert jnp.allclose(y_bf16, y_ref, atol=5e-2, rtol=5e-2)

    # Exact path: full f32, matches the PyTorch reference tightly.
    y_f32 = jax.block_until_ready(
        two_layer_net(x, w1, b1, w2, b2, compute_dtype=jnp.float32))
    assert y_f32.shape == (N, D_out)
    assert jnp.allclose(y_f32, y_ref, atol=1e-5, rtol=1e-5)

    print("KERNEL_OK")
</pallas_src>

<mosaic_0001>
module attributes {stable_mosaic.version = 11 : i64} {
  func.func @_two_layer_kernel(%arg0: i32, %arg1: memref<8x32xbf16, #tpu.memory_space<vmem>>, %arg2: memref<32x128xbf16, #tpu.memory_space<vmem>>, %arg3: memref<1x128xf32, #tpu.memory_space<vmem>>, %arg4: memref<128x128xbf16, #tpu.memory_space<vmem>>, %arg5: memref<1x128xf32, #tpu.memory_space<vmem>>, %arg6: memref<8x128xf32, #tpu.memory_space<vmem>>) attributes {dimension_semantics = [#tpu.dimension_semantics<parallel>], iteration_bounds = array<i64: 1>, scalar_prefetch = 0 : i64, scratch_operands = 0 : i64, tpu.core_type = #tpu.core_type<tc>, window_params = [{transform_indices = @transform_0, window_bounds = array<i64: 8, 32>}, {pipeline_mode = #tpu.pipeline_mode<synchronous>, transform_indices = @transform_1, window_bounds = array<i64: 32, 128>}, {pipeline_mode = #tpu.pipeline_mode<synchronous>, transform_indices = @transform_2, window_bounds = array<i64: 1, 128>}, {pipeline_mode = #tpu.pipeline_mode<synchronous>, transform_indices = @transform_3, window_bounds = array<i64: 128, 128>}, {pipeline_mode = #tpu.pipeline_mode<synchronous>, transform_indices = @transform_4, window_bounds = array<i64: 1, 128>}, {transform_indices = @transform_5, window_bounds = array<i64: 8, 128>}]} {
    %c0 = arith.constant 0 : index
    %c0_0 = arith.constant 0 : index
    %0 = vector.load %arg1[%c0, %c0_0] : memref<8x32xbf16, #tpu.memory_space<vmem>>, vector<8x32xbf16>
    %c0_1 = arith.constant 0 : index
    %c0_2 = arith.constant 0 : index
    %1 = vector.load %arg2[%c0_1, %c0_2] : memref<32x128xbf16, #tpu.memory_space<vmem>>, vector<32x128xbf16>
    %cst = arith.constant dense<0.000000e+00> : vector<8x128xf32>
    %2 = tpu.matmul %0, %1, %cst {dimension_numbers = #tpu.dot_dimension_numbers<[1], [0], [0], [1], [0, 0, 1, 1], [], []>} : vector<8x32xbf16>, vector<32x128xbf16>, vector<8x128xf32> -> vector<8x128xf32>
    %c0_3 = arith.constant 0 : index
    %c0_4 = arith.constant 0 : index
    %3 = vector.load %arg3[%c0_3, %c0_4] : memref<1x128xf32, #tpu.memory_space<vmem>>, vector<1x128xf32>
    %4 = vector.broadcast %3 : vector<1x128xf32> to vector<8x128xf32>
    %5 = arith.addf %2, %4 : vector<8x128xf32>
    %cst_5 = arith.constant 0.000000e+00 : f32
    %6 = vector.broadcast %cst_5 : f32 to vector<8x128xf32>
    %7 = arith.maximumf %5, %6 : vector<8x128xf32>
    %8 = arith.truncf %7 : vector<8x128xf32> to vector<8x128xbf16>
    %c0_6 = arith.constant 0 : index
    %c0_7 = arith.constant 0 : index
    %9 = vector.load %arg4[%c0_6, %c0_7] : memref<128x128xbf16, #tpu.memory_space<vmem>>, vector<128x128xbf16>
    %cst_8 = arith.constant dense<0.000000e+00> : vector<8x128xf32>
    %10 = tpu.matmul %8, %9, %cst_8 {dimension_numbers = #tpu.dot_dimension_numbers<[1], [0], [0], [1], [0, 0, 1, 1], [], []>} : vector<8x128xbf16>, vector<128x128xbf16>, vector<8x128xf32> -> vector<8x128xf32>
    %c0_9 = arith.constant 0 : index
    %c0_10 = arith.constant 0 : index
    %11 = vector.load %arg5[%c0_9, %c0_10] : memref<1x128xf32, #tpu.memory_space<vmem>>, vector<1x128xf32>
    %12 = vector.broadcast %11 : vector<1x128xf32> to vector<8x128xf32>
    %13 = arith.addf %10, %12 : vector<8x128xf32>
    %cst_11 = arith.constant dense<0xFF800000> : vector<8xf32>
    %14 = vector.multi_reduction <maximumf>, %13, %cst_11 [1] : vector<8x128xf32> to vector<8xf32>
    %15 = vector.shape_cast %14 : vector<8xf32> to vector<8x1xf32>
    %16 = vector.broadcast %15 : vector<8x1xf32> to vector<8x128xf32>
    %17 = arith.subf %13, %16 : vector<8x128xf32>
    %18 = math.exp %17 : vector<8x128xf32>
    %cst_12 = arith.constant dense<0.000000e+00> : vector<8xf32>
    %19 = vector.multi_reduction <add>, %18, %cst_12 [1] : vector<8x128xf32> to vector<8xf32>
    %20 = vector.shape_cast %19 : vector<8xf32> to vector<8x1xf32>
    %21 = math.log %20 : vector<8x1xf32>
    %22 = vector.broadcast %21 : vector<8x1xf32> to vector<8x128xf32>
    %23 = arith.subf %17, %22 : vector<8x128xf32>
    %c0_13 = arith.constant 0 : index
    %c0_14 = arith.constant 0 : index
    %24 = vector.load %arg6[%c0_13, %c0_14] : memref<8x128xf32, #tpu.memory_space<vmem>>, vector<8x128xf32>
    tpu.vector_store %arg6[%c0_13, %c0_14], %23 {strides = array<i32>} : memref<8x128xf32, #tpu.memory_space<vmem>>, vector<8x128xf32>,
    return
  }
  func.func @transform_0(%arg0: i32) -> (i32, i32) {
    %c0_i32 = arith.constant 0 : i32
    %c0_i32_0 = arith.constant 0 : i32
    return %arg0, %c0_i32 : i32, i32
  }
  func.func @transform_1(%arg0: i32) -> (i32, i32) {
    %c0_i32 = arith.constant 0 : i32
    %c0_i32_0 = arith.constant 0 : i32
    %c0_i32_1 = arith.constant 0 : i32
    return %c0_i32, %c0_i32_0 : i32, i32
  }
  func.func @transform_2(%arg0: i32) -> (i32, i32) {
    %c0_i32 = arith.constant 0 : i32
    %c0_i32_0 = arith.constant 0 : i32
    %c0_i32_1 = arith.constant 0 : i32
    return %c0_i32, %c0_i32_0 : i32, i32
  }
  func.func @transform_3(%arg0: i32) -> (i32, i32) {
    %c0_i32 = arith.constant 0 : i32
    %c0_i32_0 = arith.constant 0 : i32
    %c0_i32_1 = arith.constant 0 : i32
    return %c0_i32, %c0_i32_0 : i32, i32
  }
  func.func @transform_4(%arg0: i32) -> (i32, i32) {
    %c0_i32 = arith.constant 0 : i32
    %c0_i32_0 = arith.constant 0 : i32
    %c0_i32_1 = arith.constant 0 : i32
    return %c0_i32, %c0_i32_0 : i32, i32
  }
  func.func @transform_5(%arg0: i32) -> (i32, i32) {
    %c0_i32 = arith.constant 0 : i32
    %c0_i32_0 = arith.constant 0 : i32
    return %arg0, %c0_i32 : i32, i32
  }
}

</mosaic_0001>

<bundles_post_ra>
// kernel: two_layer_net.1
= control target key start
LH: loop header
LB: loop body
LE: loop exit
PB: predicated region body
PF: predicated region fallthrough
CT: control target
= control target key end

     0   :  { %v322_v1 = vmov 0.0   ;;  %vm323_vm0 = vmmov 0   ;;  %vm46_vm1 = vcmask 261120   ;;  %s406_s0 = inlined_call_operand.vmem [shape: bf16[8,32], index: 0, kind: input, shape index: {}]   ;;  %s407_s1 = inlined_call_operand.vmem [shape: bf16[32,128], index: 1, kind: input, shape index: {}]   ;;  %s408_s2 = inlined_call_operand.vmem [shape: f32[1,128], index: 2, kind: input, shape index: {}]   ;;  %s409_s3 = inlined_call_operand.vmem [shape: bf16[128,128], index: 3, kind: input, shape index: {}]   ;;  %s410_s4 = inlined_call_operand.vmem [shape: f32[1,128], index: 4, kind: input, shape index: {}]   ;;  %s411_s5 = inlined_call_operand.hbm [shape: f32[8,128], index: 5, kind: output, shape index: {}]  }
   0x1   :  { %v284_v0 = vld [vmem:[%s407_s1] sm:$0xff]   ;;  %253 = vmatprep.subr.bf16.mxu0 %v322_v1  ;;  %261 = vmatprep.subr.bf16.mxu1 %v322_v1  ;;  %v285_v2 = vld [vmem:[%s407_s1 + $0x8] sm:$0xff]   ;;  %v288_v6 = vld [vmem:[%s409_s3 + $0x10] sm:$0xff]  }
   0x2   :  { %254 = vmatpush3.bf16.msra.mxu0 %v284_v0  ;;  %257 = vmatprep.mubr.msk.bf16.mxu0 %vm323_vm0, %v322_v1  ;;  %v286_v3 = vld [vmem:[%s409_s3] sm:$0xff]   ;;  %v287_v4 = vld [vmem:[%s409_s3 + $0x8] sm:$0xff]  }
   0x3   :  { %255 = vmatprep.subr.bf16.mxu0 %v322_v1  ;;  %277 = vmatprep.mubr.msk.bf16.mxu1 %vm323_vm0, %v322_v1  ;;  %v22_v5 = vld [vmem:[%s406_s0] sm:$0xf] }
   0x4   :  { %262 = vmatpush3.bf16.msra.mxu1 %v286_v3 }
   0x5   :  { %263 = vmatprep.subr.bf16.mxu1 %v322_v1 }
   0x6   :  { %256 = vmatpush3.bf16.msra.mxu0 %v285_v2 }
   0x8   :  { %264 = vmatpush3.bf16.msra.mxu1 %v287_v4 }
   0x9   :  { %258 = vmatmul.mubr.msk.bf16.vlgmr.msra.gmra.mrb[0].mxu0 %vm46_vm1, %v22_v5  ;;  %265 = vmatprep.subr.bf16.mxu1 %v322_v1 }
   0xa   :  { %10 = vsyncpa [#allocation3], 0  ;;  %v289_v7 = vld [vmem:[%s409_s3 + $0x18] sm:$0xff]   ;;  %v290_v8 = vld [vmem:[%s409_s3 + $0x20] sm:$0xff]  }
   0xb   :  { %v291_v9 = vld [vmem:[%s409_s3 + $0x28] sm:$0xff]   ;;  %v292_v10 = vld [vmem:[%s409_s3 + $0x30] sm:$0xff]   ;;  %v293_v11 = vld [vmem:[%s409_s3 + $0x38] sm:$0xff]  }
   0xc   :  { %266 = vmatpush3.bf16.msra.mxu1 %v288_v6  ;;  %v228_v12 = vld [vmem:[%s408_s2] ss:$0 sm:$0xff]  ;;  %s324_s2 = smov [#allocation2]  }
   0xd   :  { %267 = vmatprep.subr.bf16.mxu1 %v322_v1  ;;  %v232_v20 = vld [vmem:[%s410_s4] ss:$0 sm:$0xff]  ;;  %s220_s3 = sshll.u32 %s324_s2, 4  ;;  %s221_s3 = int_to_ptr.vmem [resolvable:$true] %s220_s3 }
   0xe   :  { %s298_s4 = scalar_lea.vmem %s221_s3, 128  ;;  %p303_p1 = scmp.lt.s32.totalorder %s221_s3, %s221_s3 }
   0xf   :  { %p299_p0 = scmp.ne.s32.totalorder %s221_s3, %s298_s4  ;;  %p304_p2 = scmp.lt.s32.totalorder %s298_s4, %s298_s4 }
  0x10   :  { %268 = vmatpush3.bf16.msra.mxu1 %v289_v7 }
  0x11   :  { %269 = vmatprep.subr.bf16.mxu1 %v322_v1  ;;  %p305_p3 = por %p304_p2, %p303_p1 }
  0x13   :  { %p306_p4 = pnand %p305_p3, %p299_p0 }
  0x14   :  { %270 = vmatpush3.bf16.msra.mxu1 %v290_v8 }
  0x15   :  { %271 = vmatprep.subr.bf16.mxu1 %v322_v1 }
  0x18   :  { %272 = vmatpush3.bf16.msra.mxu1 %v291_v9 }
  0x19   :  { %273 = vmatprep.subr.bf16.mxu1 %v322_v1 }
  0x1c   :  { %274 = vmatpush3.bf16.msra.mxu1 %v292_v10 }
  0x1d   :  { %275 = vmatprep.subr.bf16.mxu1 %v322_v1 }
  0x20   :  { %276 = vmatpush3.bf16.msra.mxu1 %v293_v11 }
  0xdc   :  { %v84_v13 = vpop.f32.mrb[0].mxu0 }
  0xdd   :  { %v85_v14 = vadd.f32 %v228_v12, %v84_v13  ;;  %v259_v15 = vpop.f32.mrb[1].mxu0 }
  0xde   :  { %v87_v16 = vpop.f32.mrb[2].mxu0 }
  0xdf   :  { %v90_v17 = vmax.f32 %v85_v14, 0.0  ;;  %v260_v18 = vpop.f32.mrb[3].mxu0 }
  0xe1   :  { %v91_v19 = vpack.c.bf16 %v90_v17, %v90_v17 }
  0xe3   :  { %278 = vmatmul.mubr.bf16.vlgmr.msra.gmra.mrb[0].mxu1 %v91_v19 }
 0x1b6   :  { %v197_v21 = vpop.f32.mrb[0].mxu1 }
 0x1b7   :  { %v198_v22 = vadd.f32 %v232_v20, %v197_v21  ;;  %v279_v23 = vpop.f32.mrb[1].mxu1 }
 0x1b8   :  { %v200_v24 = vpop.f32.mrb[2].mxu1 }
 0x1b9   :  { %203 = vmax.xlane.f32.xlu0 %v198_v22  ;;  %v280_v25 = vpop.f32.mrb[3].mxu1 }
 0x246   :  { %v204_v26 = vpop.xlane.xlu0 %203 }
 0x247   :  { %v205_v27 = vsub.f32 %v198_v22, %v204_v26 }
 0x249   :  { %v206_v28 = vmul.f32 1.442695, %v205_v27 }
 0x24b   :  { %294 = vpow2.f32 %v206_v28 }
 0x255   :  { %v295_v29 = vpop.eup %294 }
 0x256   :  { %208 = vadd.xlane.f32.xlu0 %v295_v29 }
 0x2e3   :  { %v209_v30 = vpop.xlane.xlu0 %208 }
 0x2e4   :  { %296 = vlog2.f32 %v209_v30 }
 0x2ee   :  { %v297_v31 = vpop.eup %296 }
 0x2ef   :  { %v211_v32 = vmul.f32 0.6931472, %v297_v31 }
 0x2f1   :  { %v212_v33 = vsub.f32 %v205_v27, %v211_v32 }
 0x2f3   :  { %213 = vst [vmem:[#allocation2] sm:$0xff] %v212_v33 }
 0x2f4   :  { %309 = shalt.err (!%p306_p4)
}
 0x2f5   :  { %s310_s19 = scalar_lea.hbm %s411_s5, 128 }
 0x2f6   :  { %p311_p5 = scmp.ne.s32.totalorder %s411_s5, %s310_s19  ;;  %p314_p6 = scmp.lt.u32.totalorder %s310_s19, %s411_s5 }
 0x2f8   :  { %p316_p7 = pnand %p314_p6, %p311_p5 }
 0x2fa   :  { %319 = shalt.err (!%p316_p7)
}
 0x2fb   :  { %223 = dma.vmem_to_hbm [thread:$0]  %s221_s3, 128, %s411_s5, [#allocation3]  }
 0x2fc   :  { %320 = dma.done.wait [#allocation3], 128  }
 0x2fd   :  { %321 = vsyncadd [#allocation3], 4294967168 }
 0x2fe   :  { %227 = vsyncpa [#allocation3], 1 }

</bundles_post_ra>
